<compile_context>
chip_gen: v5e
topology: v5e:2x2
jax: 0.10.0
libtpu: 0.0.40
codegen_flags: <defaults>
</compile_context>

<pallas_src>
import jax
import jax.numpy as jnp
import numpy as np
from jax.experimental import pallas as pl
from jax.experimental.pallas import tpu as pltpu


_BIG_LANES = 512       # lane-dense slab width (multiple of 128)
_BIG_TILE_ROWS = 256   # rows per block (multiple of 8)


def _round_up(a: int, b: int) -> int:
    return ((a + b - 1) // b) * b


def _poly_horner_kernel(coef_ref, x_ref, o_ref):
    """o = sum_i coef[i] * x**(degree-i), evaluated with Horner's rule."""
    ncoef = coef_ref.shape[0]
    x = x_ref[...].astype(jnp.float32)
    acc = jnp.zeros_like(x) + coef_ref[0]          # acc = c0, broadcast to the tile
    for i in range(1, ncoef):                      # static unroll (small degree)
        acc = acc * x + coef_ref[i]
    o_ref[...] = acc.astype(o_ref.dtype)


def poly1d_forward(x: jax.Array, coefficients: jax.Array) -> jax.Array:
    orig_shape = x.shape
    dtype = x.dtype
    n = int(np.prod(orig_shape)) if orig_shape else 1

    # Pick a lane-dense tiling: big inputs get (256, 512) f32 blocks; small
    # inputs collapse to a single (mult-of-8, 128) block.
    if n >= _BIG_LANES * _BIG_TILE_ROWS:
        lanes, tile_rows = _BIG_LANES, _BIG_TILE_ROWS
    else:
        lanes = 128
        tile_rows = _round_up(max(pl.cdiv(n, lanes), 1), 8)

    padded = _round_up(n, lanes * tile_rows)
    flat = x.reshape(-1)
    if padded != n:
        flat = jnp.pad(flat, (0, padded - n))
    x2d = flat.reshape(padded // lanes, lanes)
    grid = (x2d.shape[0] // tile_rows,)

    coefs = jnp.asarray(coefficients, jnp.float32).reshape(-1)

    out2d = pl.pallas_call(
        _poly_horner_kernel,
        out_shape=jax.ShapeDtypeStruct(x2d.shape, dtype),
        grid_spec=pltpu.PrefetchScalarGridSpec(
            num_scalar_prefetch=0,
            grid=grid,
            in_specs=[
                pl.BlockSpec(memory_space=pltpu.MemorySpace.SMEM),   # coefficients
                pl.BlockSpec((tile_rows, lanes), lambda i: (i, 0)),  # x tiles
            ],
            out_specs=pl.BlockSpec((tile_rows, lanes), lambda i: (i, 0)),
        ),
        compiler_params=pltpu.CompilerParams(
            dimension_semantics=("parallel",)),
    )(coefs, x2d)

    return out2d.reshape(-1)[:n].reshape(orig_shape)


class VectorizedPoly1D:
    """JAX/Pallas port of the PyTorch VectorizedPoly1D module."""

    def __init__(self, coefficients):
        self.coefficients = jnp.asarray(coefficients, jnp.float32)
        self.degree = int(self.coefficients.shape[0]) - 1

    def forward(self, x):
        return poly1d_forward(x, self.coefficients)

    __call__ = forward


def _reference(x, coefficients):
    coefs = np.asarray(coefficients, np.float32)
    degree = len(coefs) - 1
    xf = np.asarray(x, np.float32)
    result = np.zeros_like(xf)
    for i, c in enumerate(coefs):
        result += c * xf ** (degree - i)
    return result


if __name__ == "__main__":
    key = jax.random.PRNGKey(0)
    # Same values as xfuser's flux_coef buffer (degree-4 polynomial).
    coefficients = jnp.array(
        [498.651651, -283.781631, 55.8554382, -3.82021401, 0.264230861],
        dtype=jnp.float32)
    model = VectorizedPoly1D(coefficients)

    k1, k2, k3 = jax.random.split(key, 3)

    # Small 4-D input (single-block path).
    x_small = jax.random.normal(k1, (2, 4, 16, 16), jnp.float32)
    y_small = model(x_small)

    # Odd, non-128-aligned shape (exercises flatten + pad + slice-back).
    x_odd = jax.random.normal(k2, (3, 7, 50), jnp.float32)
    y_odd = model(x_odd)

    # Larger input (multi-block "parallel" grid with padding).
    x_big = jax.random.normal(k3, (300_000,), jnp.float32)
    y_big = model(x_big)

    jax.block_until_ready((y_small, y_odd, y_big))

    np.testing.assert_allclose(np.asarray(y_small), _reference(x_small, coefficients),
                               rtol=5e-3, atol=1.0)
    np.testing.assert_allclose(np.asarray(y_odd), _reference(x_odd, coefficients),
                               rtol=5e-3, atol=1.0)
    np.testing.assert_allclose(np.asarray(y_big), _reference(x_big, coefficients),
                               rtol=5e-3, atol=1.0)

    print("KERNEL_OK")
</pallas_src>

<mosaic_0001>
module attributes {stable_mosaic.version = 11 : i64} {
  func.func @_poly_horner_kernel(%arg0: i32, %arg1: memref<5xf32, #tpu.memory_space<smem>>, %arg2: memref<16x128xf32, #tpu.memory_space<vmem>>, %arg3: memref<16x128xf32, #tpu.memory_space<vmem>>) attributes {dimension_semantics = [#tpu.dimension_semantics<parallel>], iteration_bounds = array<i64: 1>, scalar_prefetch = 0 : i64, scratch_operands = 0 : i64, tpu.core_type = #tpu.core_type<tc>, window_params = [{transform_indices = @transform_0, window_bounds = array<i64: 5>}, {transform_indices = @transform_1, window_bounds = array<i64: 16, 128>}, {transform_indices = @transform_2, window_bounds = array<i64: 16, 128>}]} {
    %c0 = arith.constant 0 : index
    %c0_0 = arith.constant 0 : index
    %0 = vector.load %arg2[%c0, %c0_0] : memref<16x128xf32, #tpu.memory_space<vmem>>, vector<16x128xf32>
    %cst = arith.constant 0.000000e+00 : f32
    %1 = vector.broadcast %cst : f32 to vector<16x128xf32>
    %c0_1 = arith.constant 0 : index
    %2 = memref.load %arg1[%c0_1] : memref<5xf32, #tpu.memory_space<smem>>
    %3 = vector.broadcast %2 : f32 to vector<16x128xf32>
    %4 = arith.addf %1, %3 : vector<16x128xf32>
    %5 = arith.mulf %4, %0 : vector<16x128xf32>
    %c1 = arith.constant 1 : index
    %6 = memref.load %arg1[%c1] : memref<5xf32, #tpu.memory_space<smem>>
    %7 = vector.broadcast %6 : f32 to vector<16x128xf32>
    %8 = arith.addf %5, %7 : vector<16x128xf32>
    %9 = arith.mulf %8, %0 : vector<16x128xf32>
    %c2 = arith.constant 2 : index
    %10 = memref.load %arg1[%c2] : memref<5xf32, #tpu.memory_space<smem>>
    %11 = vector.broadcast %10 : f32 to vector<16x128xf32>
    %12 = arith.addf %9, %11 : vector<16x128xf32>
    %13 = arith.mulf %12, %0 : vector<16x128xf32>
    %c3 = arith.constant 3 : index
    %14 = memref.load %arg1[%c3] : memref<5xf32, #tpu.memory_space<smem>>
    %15 = vector.broadcast %14 : f32 to vector<16x128xf32>
    %16 = arith.addf %13, %15 : vector<16x128xf32>
    %17 = arith.mulf %16, %0 : vector<16x128xf32>
    %c4 = arith.constant 4 : index
    %18 = memref.load %arg1[%c4] : memref<5xf32, #tpu.memory_space<smem>>
    %19 = vector.broadcast %18 : f32 to vector<16x128xf32>
    %20 = arith.addf %17, %19 : vector<16x128xf32>
    %c0_2 = arith.constant 0 : index
    %c0_3 = arith.constant 0 : index
    %21 = vector.load %arg3[%c0_2, %c0_3] : memref<16x128xf32, #tpu.memory_space<vmem>>, vector<16x128xf32>
    tpu.vector_store %arg3[%c0_2, %c0_3], %20 {strides = array<i32>} : memref<16x128xf32, #tpu.memory_space<vmem>>, vector<16x128xf32>,
    return
  }
  func.func @transform_0(%arg0: i32) -> i32 {
    %c0_i32 = arith.constant 0 : i32
    %c0_i32_0 = arith.constant 0 : i32
    return %c0_i32 : i32
  }
  func.func @transform_1(%arg0: i32) -> (i32, i32) {
    %c0_i32 = arith.constant 0 : i32
    %c0_i32_0 = arith.constant 0 : i32
    return %arg0, %c0_i32 : i32, i32
  }
  func.func @transform_2(%arg0: i32) -> (i32, i32) {
    %c0_i32 = arith.constant 0 : i32
    %c0_i32_0 = arith.constant 0 : i32
    return %arg0, %c0_i32 : i32, i32
  }
}

</mosaic_0001>

<bundles_post_ra>
// kernel: tpu_custom_call.1
= control target key start
LH: loop header
LB: loop body
LE: loop exit
PB: predicated region body
PF: predicated region fallthrough
CT: control target
= control target key end

     0   :  { %7 = vsyncpa [#allocation5], 0  ;;  %s202_s0 = inlined_call_operand.hbm [shape: f32[5], index: 0, kind: input, shape index: {}]   ;;  %s203_s1 = inlined_call_operand.hbm [shape: f32[16,128], index: 1, kind: input, shape index: {}]   ;;  %s204_s2 = inlined_call_operand.hbm [shape: f32[16,128], index: 2, kind: output, shape index: {}]  }
   0x1   :  { %8 = vsyncpa [#allocation3], 0 }
   0x2   :  { %9 = vsyncpa [#allocation4], 0  ;;  %s15_s11 = sshll.u32 %s202_s0, 4  ;;  %s23_s14 = sshll.u32 %s203_s1, 4  ;;  %s16_s11 = int_to_ptr.hbm [resolvable:$true] %s15_s11  ;;  %s24_s14 = int_to_ptr.hbm [resolvable:$true] %s23_s14 }
   0x3   :  { %s167_s15 = smov [#allocation2]   ;;  %s168_s16 = smov [#allocation6]  }
   0x4   :  { %18 = dma.hbm_to_smem %s16_s11, 16, %s167_s15, [#allocation5]  }
   0x5   :  { %s25_s17 = sshll.u32 %s168_s16, 4  ;;  %s169_s18 = smov 128   ;;  %s26_s17 = int_to_ptr.vmem [resolvable:$true] %s25_s17 }
   0x6   :  { %s170_s19 = smov 8  }
   0x7   :  { %31 = dma.hbm_to_vmem [thread:$0]  %s24_s14, 256, %s26_s17, [#allocation3], %s169_s18, %s169_s18, %s170_s19  }
   0x8   :  { %161 = dma.done.wait [#allocation5], 16  }
   0x9   :  { %162 = vsyncadd [#allocation5], 4294967280 }
   0xa   :  { %163 = dma.done.wait [#allocation3], 256  }
   0xb   :  { %164 = vsyncadd [#allocation3], 4294967040 }
   0xc   :  { %40 = sfence }
   0xd   :  { %s43_s0 = sld [smem:[#allocation2]]  ;;  %v41_v0 = vld [vmem:[#allocation6] sm:$0xff]  ;;  %v42_v1 = vld [vmem:[#allocation6 + $0x8] sm:$0xff]  ;;  %s171_s23 = smov [#allocation7]  }
   0xe   :  { %s92_s20 = sld [smem:[#allocation2 + $0x1]]  ;;  %s76_s24 = sshll.u32 %s171_s23, 4  ;;  %s77_s24 = int_to_ptr.vmem [resolvable:$true] %s76_s24 }
   0xf   :  { %s93_s1 = sld [smem:[#allocation2 + $0x2]]  ;;  %s78_s27 = sshll.u32 %s204_s2, 4  ;;  %s79_s27 = int_to_ptr.hbm [resolvable:$true] %s78_s27 }
  0x10   :  { %s94_s21 = sld [smem:[#allocation2 + $0x3]] }
  0x11   :  { %s95_s22 = sld [smem:[#allocation2 + $0x4]] }
  0x13   :  { %v44_v2 = vstv %s43_s0 }
  0x14   :  { %v46_v3 = vmul.f32 %v44_v2, %v41_v0  ;;  %v49_v4 = vstv %s92_s20  ;;  %v47_v5 = vmul.f32 %v44_v2, %v42_v1 }
  0x15   :  { %v55_v8 = vstv %s93_s1 }
  0x16   :  { %v50_v6 = vadd.f32 %v49_v4, %v46_v3  ;;  %v51_v7 = vadd.f32 %v49_v4, %v47_v5  ;;  %v61_v13 = vstv %s94_s21 }
  0x17   :  { %v67_v18 = vstv %s95_s22 }
  0x18   :  { %v52_v9 = vmul.f32 %v50_v6, %v41_v0  ;;  %v53_v10 = vmul.f32 %v51_v7, %v42_v1 }
  0x1a   :  { %v56_v11 = vadd.f32 %v55_v8, %v52_v9  ;;  %v57_v12 = vadd.f32 %v55_v8, %v53_v10 }
  0x1c   :  { %v58_v14 = vmul.f32 %v56_v11, %v41_v0  ;;  %v59_v15 = vmul.f32 %v57_v12, %v42_v1 }
  0x1e   :  { %v62_v16 = vadd.f32 %v61_v13, %v58_v14  ;;  %v63_v17 = vadd.f32 %v61_v13, %v59_v15 }
  0x20   :  { %v64_v19 = vmul.f32 %v62_v16, %v41_v0  ;;  %v65_v20 = vmul.f32 %v63_v17, %v42_v1 }
  0x22   :  { %v68_v21 = vadd.f32 %v67_v18, %v64_v19  ;;  %v69_v22 = vadd.f32 %v67_v18, %v65_v20 }
  0x24   :  { %70 = vst [vmem:[#allocation7] sm:$0xff] %v68_v21 }
  0x25   :  { %71 = vst [vmem:[#allocation7 + $0x8] sm:$0xff] %v69_v22 }
  0x26   :  { %84 = dma.vmem_to_hbm [thread:$0]  %s77_s24, 256, %s79_s27, [#allocation4], %s169_s18, %s169_s18, %s170_s19  }
  0x27   :  { %165 = dma.done.wait [#allocation4], 256  }
  0x28   :  { %166 = vsyncadd [#allocation4], 4294967040 }
  0x29   :  { %89 = vsyncpa [#allocation3], 1 }
  0x2a   :  { %90 = vsyncpa [#allocation4], 1 }
  0x2b   :  { %91 = vsyncpa [#allocation5], 1 }

</bundles_post_ra>
